<compile_context>
chip_gen: v5e
topology: v5e:2x2
jax: 0.10.0
libtpu: 0.0.40
codegen_flags: <defaults>
</compile_context>

<pallas_src>
import jax
import jax.numpy as jnp
from jax.experimental import pallas as pl
from jax.experimental.pallas import tpu as pltpu

LANE = 128     # TPU lane width: present every feature axis as 128 lanes.
SUBLANE = 8    # TPU sublane width: pad the tiny pooled-output row axis to 8.


# ----------------------------------------------------------------------------
# Fused Pallas kernel
# ----------------------------------------------------------------------------

def _encoder_fused_kernel(x_ref, a_ref, p_ref,
                          w1_ref, b1_ref, w2_ref, b2_ref,
                          wp_ref, bp_ref, gamma_ref, beta_ref,
                          alpha_ref,
                          g_ref, hpred_ref):
    """Fused forward: GCN x2 -> global_add_pool -> Linear+BN+PReLU (+Dropout=id)."""
    # --- GCN layer 1: relu(A_hat @ (X @ W1) + b1) ---
    xw = jnp.dot(x_ref[...], w1_ref[...], preferred_element_type=jnp.float32)
    h = jnp.maximum(
        jnp.dot(a_ref[...], xw, preferred_element_type=jnp.float32) + b1_ref[...],
        0.0)
    # --- GCN layer 2: relu(A_hat @ (H @ W2) + b2) ---
    hw = jnp.dot(h, w2_ref[...], preferred_element_type=jnp.float32)
    h = jnp.maximum(
        jnp.dot(a_ref[...], hw, preferred_element_type=jnp.float32) + b2_ref[...],
        0.0)
    # --- global_add_pool: one-hot(batch) @ H -> (G_pad, hidden_pad) ---
    g_ref[...] = jnp.dot(p_ref[...], h, preferred_element_type=jnp.float32)
    # --- predictor: Linear -> BatchNorm1d (batch stats, eps=1e-5) -> PReLU -> Dropout(eval) ---
    y = jnp.dot(h, wp_ref[...], preferred_element_type=jnp.float32) + bp_ref[...]
    mean = jnp.mean(y, axis=0, keepdims=True)
    centered = y - mean
    var = jnp.mean(centered * centered, axis=0, keepdims=True)  # biased var (PyTorch training)
    xn = centered * jax.lax.rsqrt(var + 1e-5)
    xn = xn * gamma_ref[...] + beta_ref[...]
    alpha = alpha_ref[0]                                   # scalar read from SMEM
    hpred_ref[...] = jnp.where(xn >= 0.0, xn, alpha * xn)  # PReLU; Dropout = identity


# ----------------------------------------------------------------------------
# Single jitted wrapper (one kernel launch for the whole module forward)
# ----------------------------------------------------------------------------

def _pad_last(a, target):
    pad = target - a.shape[-1]
    if pad == 0:
        return a
    return jnp.pad(a, [(0, 0)] * (a.ndim - 1) + [(0, pad)])


def _pad_mat(w, rows, cols):
    return jnp.pad(w, ((0, rows - w.shape[0]), (0, cols - w.shape[1])))


def _ceil_to(v, m):
    return (v + m - 1) // m * m


@jax.jit
def encoder_forward(params, x, a_hat, pool_onehot):
    """Mirrors Encoder.forward(x, edge_index, edge_weight, batch).

    aug1 == aug2 == identity and the target encoder is a deepcopy of the
    online encoder, so all four encoder passes are bitwise identical: the
    fused kernel runs once and its outputs are aliased for all six returns.
    """
    n, _ = x.shape
    g_cnt = pool_onehot.shape[0]
    g_pad_cnt = _ceil_to(g_cnt, SUBLANE)
    hidden = params["w1"].shape[1]

    # Zero-pad every feature axis to 128 lanes (exact: padded columns stay 0
    # through matmul / ReLU / per-feature BatchNorm / PReLU).  Pool rows are
    # zero-padded to 8 sublanes (exact: zero one-hot rows pool to zero).
    xp = _pad_last(x, LANE)
    pool = jnp.pad(pool_onehot, ((0, g_pad_cnt - g_cnt), (0, 0)))
    w1 = _pad_mat(params["w1"], LANE, LANE)
    w2 = _pad_mat(params["w2"], LANE, LANE)
    wp = _pad_mat(params["pred_w_t"], LANE, LANE)
    b1 = _pad_last(params["b1"], LANE)
    b2 = _pad_last(params["b2"], LANE)
    bp = _pad_last(params["pred_b"], LANE)
    gamma = _pad_last(params["bn_gamma"], LANE)
    beta = _pad_last(params["bn_beta"], LANE)
    alpha = params["prelu_alpha"].reshape((1,))

    in_specs = ([pl.BlockSpec(memory_space=pltpu.MemorySpace.VMEM) for _ in range(11)]
                + [pl.BlockSpec(memory_space=pltpu.MemorySpace.SMEM)])

    g_full, hpred_full = pl.pallas_call(
        _encoder_fused_kernel,
        out_shape=(jax.ShapeDtypeStruct((g_pad_cnt, LANE), jnp.float32),
                   jax.ShapeDtypeStruct((n, LANE), jnp.float32)),
        in_specs=in_specs,
        out_specs=(pl.BlockSpec(memory_space=pltpu.MemorySpace.VMEM),
                   pl.BlockSpec(memory_space=pltpu.MemorySpace.VMEM)),
    )(xp, a_hat, pool, w1, b1, w2, b2, wp, bp, gamma, beta, alpha)

    g = g_full[:g_cnt, :hidden]
    h_pred = hpred_full[:, :hidden]
    # (g1, g2, h1_pred, h2_pred, g1_target, g2_target) — identical branches.
    return g, g, h_pred, h_pred, g, g


# ----------------------------------------------------------------------------
# Parameter / input construction (deterministic, synthetic)
# ----------------------------------------------------------------------------

def build_params(key, f_in, hidden):
    ks = jax.random.split(key, 4)
    return {
        # 2-layer GCN stand-in encoder (target encoder = deepcopy -> same weights).
        "w1": jax.random.normal(ks[0], (f_in, hidden), jnp.float32) * 0.1,
        "b1": jnp.zeros((1, hidden), jnp.float32),
        "w2": jax.random.normal(ks[1], (hidden, hidden), jnp.float32) * 0.1,
        "b2": jnp.zeros((1, hidden), jnp.float32),
        # predictor Linear(hidden, hidden): stored transposed so kernel does h @ W^T + b.
        "pred_w_t": jax.random.normal(ks[2], (hidden, hidden), jnp.float32) * 0.1,
        "pred_b": jax.random.normal(ks[3], (1, hidden), jnp.float32) * 0.1,
        "bn_gamma": jnp.ones((1, hidden), jnp.float32),
        "bn_beta": jnp.zeros((1, hidden), jnp.float32),
        "prelu_alpha": jnp.full((1,), 0.25, jnp.float32),
    }


def build_graph(key, n_nodes, f_in, n_graphs):
    kx, ke = jax.random.split(key)
    x = jax.random.normal(kx, (n_nodes, f_in), jnp.float32)

    # Random undirected edges -> dense symmetric-normalized adjacency with self loops.
    probs = jax.random.uniform(ke, (n_nodes, n_nodes))
    adj = (probs + probs.T > 1.4).astype(jnp.float32)
    adj = adj * (1.0 - jnp.eye(n_nodes)) + jnp.eye(n_nodes)  # A + I
    deg = jnp.sum(adj, axis=1)
    d_inv_sqrt = 1.0 / jnp.sqrt(deg)
    a_hat = adj * d_inv_sqrt[:, None] * d_inv_sqrt[None, :]

    # Batch vector: nodes evenly split across graphs -> one-hot pooling matrix.
    batch = jnp.repeat(jnp.arange(n_graphs), n_nodes // n_graphs)
    pool_onehot = jax.nn.one_hot(batch, n_graphs, dtype=jnp.float32).T  # (G, N)
    return x, a_hat, pool_onehot


if __name__ == "__main__":
    N_NODES = 16
    F_IN = 8
    HIDDEN = 32
    N_GRAPHS = 2

    key = jax.random.PRNGKey(0)
    k_params, k_graph = jax.random.split(key)

    params = build_params(k_params, F_IN, HIDDEN)
    x, a_hat, pool_onehot = build_graph(k_graph, N_NODES, F_IN, N_GRAPHS)

    outs = encoder_forward(params, x, a_hat, pool_onehot)
    outs = jax.block_until_ready(outs)

    g1, g2, h1_pred, h2_pred, g1_t, g2_t = outs
    assert g1.shape == (N_GRAPHS, HIDDEN)
    assert g2.shape == (N_GRAPHS, HIDDEN)
    assert h1_pred.shape == (N_NODES, HIDDEN)
    assert h2_pred.shape == (N_NODES, HIDDEN)
    assert g1_t.shape == (N_GRAPHS, HIDDEN)
    assert g2_t.shape == (N_GRAPHS, HIDDEN)
    assert all(bool(jnp.all(jnp.isfinite(o))) for o in outs)

    print("KERNEL_OK")
</pallas_src>

<mosaic_0001>
module attributes {stable_mosaic.version = 11 : i64} {
  func.func @_encoder_fused_kernel(%arg0: memref<16x128xf32, #tpu.memory_space<vmem>>, %arg1: memref<16x16xf32, #tpu.memory_space<vmem>>, %arg2: memref<8x16xf32, #tpu.memory_space<vmem>>, %arg3: memref<128x128xf32, #tpu.memory_space<vmem>>, %arg4: memref<1x128xf32, #tpu.memory_space<vmem>>, %arg5: memref<128x128xf32, #tpu.memory_space<vmem>>, %arg6: memref<1x128xf32, #tpu.memory_space<vmem>>, %arg7: memref<128x128xf32, #tpu.memory_space<vmem>>, %arg8: memref<1x128xf32, #tpu.memory_space<vmem>>, %arg9: memref<1x128xf32, #tpu.memory_space<vmem>>, %arg10: memref<1x128xf32, #tpu.memory_space<vmem>>, %arg11: memref<1xf32, #tpu.memory_space<smem>>, %arg12: memref<8x128xf32, #tpu.memory_space<vmem>>, %arg13: memref<16x128xf32, #tpu.memory_space<vmem>>) attributes {dimension_semantics = [], scalar_prefetch = 0 : i64, scratch_operands = 0 : i64, tpu.core_type = #tpu.core_type<tc>} {
    %c0 = arith.constant 0 : index
    %c0_0 = arith.constant 0 : index
    %0 = vector.load %arg0[%c0, %c0_0] : memref<16x128xf32, #tpu.memory_space<vmem>>, vector<16x128xf32>
    %c0_1 = arith.constant 0 : index
    %c0_2 = arith.constant 0 : index
    %1 = vector.load %arg3[%c0_1, %c0_2] : memref<128x128xf32, #tpu.memory_space<vmem>>, vector<128x128xf32>
    %cst = arith.constant dense<0.000000e+00> : vector<16x128xf32>
    %2 = tpu.matmul %0, %1, %cst {dimension_numbers = #tpu.dot_dimension_numbers<[1], [0], [0], [1], [0, 0, 1, 1], [], []>} : vector<16x128xf32>, vector<128x128xf32>, vector<16x128xf32> -> vector<16x128xf32>
    %c0_3 = arith.constant 0 : index
    %c0_4 = arith.constant 0 : index
    %3 = vector.load %arg1[%c0_3, %c0_4] : memref<16x16xf32, #tpu.memory_space<vmem>>, vector<16x16xf32>
    %cst_5 = arith.constant dense<0.000000e+00> : vector<16x128xf32>
    %4 = tpu.matmul %3, %2, %cst_5 {dimension_numbers = #tpu.dot_dimension_numbers<[1], [0], [0], [1], [0, 0, 1, 1], [], []>} : vector<16x16xf32>, vector<16x128xf32>, vector<16x128xf32> -> vector<16x128xf32>
    %c0_6 = arith.constant 0 : index
    %c0_7 = arith.constant 0 : index
    %5 = vector.load %arg4[%c0_6, %c0_7] : memref<1x128xf32, #tpu.memory_space<vmem>>, vector<1x128xf32>
    %6 = vector.broadcast %5 : vector<1x128xf32> to vector<16x128xf32>
    %7 = arith.addf %4, %6 : vector<16x128xf32>
    %cst_8 = arith.constant 0.000000e+00 : f32
    %8 = vector.broadcast %cst_8 : f32 to vector<16x128xf32>
    %9 = arith.maximumf %7, %8 : vector<16x128xf32>
    %c0_9 = arith.constant 0 : index
    %c0_10 = arith.constant 0 : index
    %10 = vector.load %arg5[%c0_9, %c0_10] : memref<128x128xf32, #tpu.memory_space<vmem>>, vector<128x128xf32>
    %cst_11 = arith.constant dense<0.000000e+00> : vector<16x128xf32>
    %11 = tpu.matmul %9, %10, %cst_11 {dimension_numbers = #tpu.dot_dimension_numbers<[1], [0], [0], [1], [0, 0, 1, 1], [], []>} : vector<16x128xf32>, vector<128x128xf32>, vector<16x128xf32> -> vector<16x128xf32>
    %c0_12 = arith.constant 0 : index
    %c0_13 = arith.constant 0 : index
    %12 = vector.load %arg1[%c0_12, %c0_13] : memref<16x16xf32, #tpu.memory_space<vmem>>, vector<16x16xf32>
    %cst_14 = arith.constant dense<0.000000e+00> : vector<16x128xf32>
    %13 = tpu.matmul %12, %11, %cst_14 {dimension_numbers = #tpu.dot_dimension_numbers<[1], [0], [0], [1], [0, 0, 1, 1], [], []>} : vector<16x16xf32>, vector<16x128xf32>, vector<16x128xf32> -> vector<16x128xf32>
    %c0_15 = arith.constant 0 : index
    %c0_16 = arith.constant 0 : index
    %14 = vector.load %arg6[%c0_15, %c0_16] : memref<1x128xf32, #tpu.memory_space<vmem>>, vector<1x128xf32>
    %15 = vector.broadcast %14 : vector<1x128xf32> to vector<16x128xf32>
    %16 = arith.addf %13, %15 : vector<16x128xf32>
    %cst_17 = arith.constant 0.000000e+00 : f32
    %17 = vector.broadcast %cst_17 : f32 to vector<16x128xf32>
    %18 = arith.maximumf %16, %17 : vector<16x128xf32>
    %c0_18 = arith.constant 0 : index
    %c0_19 = arith.constant 0 : index
    %19 = vector.load %arg2[%c0_18, %c0_19] : memref<8x16xf32, #tpu.memory_space<vmem>>, vector<8x16xf32>
    %cst_20 = arith.constant dense<0.000000e+00> : vector<8x128xf32>
    %20 = tpu.matmul %19, %18, %cst_20 {dimension_numbers = #tpu.dot_dimension_numbers<[1], [0], [0], [1], [0, 0, 1, 1], [], []>} : vector<8x16xf32>, vector<16x128xf32>, vector<8x128xf32> -> vector<8x128xf32>
    %c0_21 = arith.constant 0 : index
    %c0_22 = arith.constant 0 : index
    %21 = vector.load %arg12[%c0_21, %c0_22] : memref<8x128xf32, #tpu.memory_space<vmem>>, vector<8x128xf32>
    tpu.vector_store %arg12[%c0_21, %c0_22], %20 {strides = array<i32>} : memref<8x128xf32, #tpu.memory_space<vmem>>, vector<8x128xf32>,
    %c0_23 = arith.constant 0 : index
    %c0_24 = arith.constant 0 : index
    %22 = vector.load %arg7[%c0_23, %c0_24] : memref<128x128xf32, #tpu.memory_space<vmem>>, vector<128x128xf32>
    %cst_25 = arith.constant dense<0.000000e+00> : vector<16x128xf32>
    %23 = tpu.matmul %18, %22, %cst_25 {dimension_numbers = #tpu.dot_dimension_numbers<[1], [0], [0], [1], [0, 0, 1, 1], [], []>} : vector<16x128xf32>, vector<128x128xf32>, vector<16x128xf32> -> vector<16x128xf32>
    %c0_26 = arith.constant 0 : index
    %c0_27 = arith.constant 0 : index
    %24 = vector.load %arg8[%c0_26, %c0_27] : memref<1x128xf32, #tpu.memory_space<vmem>>, vector<1x128xf32>
    %25 = vector.broadcast %24 : vector<1x128xf32> to vector<16x128xf32>
    %26 = arith.addf %23, %25 : vector<16x128xf32>
    %cst_28 = arith.constant dense<0.000000e+00> : vector<128xf32>
    %27 = vector.multi_reduction <add>, %26, %cst_28 [0] : vector<16x128xf32> to vector<128xf32>
    %28 = vector.shape_cast %27 : vector<128xf32> to vector<1x128xf32>
    %cst_29 = arith.constant 1.600000e+01 : f32
    %29 = vector.broadcast %cst_29 : f32 to vector<1x128xf32>
    %30 = arith.divf %28, %29 : vector<1x128xf32>
    %31 = vector.broadcast %30 : vector<1x128xf32> to vector<16x128xf32>
    %32 = arith.subf %26, %31 : vector<16x128xf32>
    %33 = arith.mulf %32, %32 : vector<16x128xf32>
    %cst_30 = arith.constant dense<0.000000e+00> : vector<128xf32>
    %34 = vector.multi_reduction <add>, %33, %cst_30 [0] : vector<16x128xf32> to vector<128xf32>
    %35 = vector.shape_cast %34 : vector<128xf32> to vector<1x128xf32>
    %cst_31 = arith.constant 1.600000e+01 : f32
    %36 = vector.broadcast %cst_31 : f32 to vector<1x128xf32>
    %37 = arith.divf %35, %36 : vector<1x128xf32>
    %cst_32 = arith.constant 9.99999974E-6 : f32
    %38 = vector.broadcast %cst_32 : f32 to vector<1x128xf32>
    %39 = arith.addf %37, %38 : vector<1x128xf32>
    %40 = math.rsqrt %39 : vector<1x128xf32>
    %41 = vector.broadcast %40 : vector<1x128xf32> to vector<16x128xf32>
    %42 = arith.mulf %32, %41 : vector<16x128xf32>
    %c0_33 = arith.constant 0 : index
    %c0_34 = arith.constant 0 : index
    %43 = vector.load %arg9[%c0_33, %c0_34] : memref<1x128xf32, #tpu.memory_space<vmem>>, vector<1x128xf32>
    %44 = vector.broadcast %43 : vector<1x128xf32> to vector<16x128xf32>
    %45 = arith.mulf %42, %44 : vector<16x128xf32>
    %c0_35 = arith.constant 0 : index
    %c0_36 = arith.constant 0 : index
    %46 = vector.load %arg10[%c0_35, %c0_36] : memref<1x128xf32, #tpu.memory_space<vmem>>, vector<1x128xf32>
    %47 = vector.broadcast %46 : vector<1x128xf32> to vector<16x128xf32>
    %48 = arith.addf %45, %47 : vector<16x128xf32>
    %c0_37 = arith.constant 0 : index
    %49 = memref.load %arg11[%c0_37] : memref<1xf32, #tpu.memory_space<smem>>
    %cst_38 = arith.constant 0.000000e+00 : f32
    %50 = vector.broadcast %cst_38 : f32 to vector<16x128xf32>
    %51 = arith.cmpf oge, %48, %50 : vector<16x128xf32>
    %52 = vector.broadcast %49 : f32 to vector<16x128xf32>
    %53 = arith.mulf %52, %48 : vector<16x128xf32>
    %54 = arith.select %51, %48, %53 : vector<16x128xi1>, vector<16x128xf32>
    %c0_39 = arith.constant 0 : index
    %c0_40 = arith.constant 0 : index
    %55 = vector.load %arg13[%c0_39, %c0_40] : memref<16x128xf32, #tpu.memory_space<vmem>>, vector<16x128xf32>
    tpu.vector_store %arg13[%c0_39, %c0_40], %54 {strides = array<i32>} : memref<16x128xf32, #tpu.memory_space<vmem>>, vector<16x128xf32>,
    return
  }
}

</mosaic_0001>

<bundles_post_ra>
// kernel: encoder_forward.1
= control target key start
LH: loop header
LB: loop body
LE: loop exit
PB: predicated region body
PF: predicated region fallthrough
CT: control target
= control target key end

     0   :  { %vm91_vm0 = vcmask 130048   ;;  %s606_s3 = inlined_call_operand.vmem [shape: f32[128,128], index: 3, kind: input, shape index: {}]   ;;  %s607_s0 = inlined_call_operand.vmem [shape: f32[16,128], index: 0, kind: input, shape index: {}]   ;;  %s608_s4 = inlined_call_operand.vmem [shape: f32[1,128], index: 4, kind: input, shape index: {}]   ;;  %s609_s5 = inlined_call_operand.vmem [shape: f32[128,128], index: 5, kind: input, shape index: {}]   ;;  %s610_s1 = inlined_call_operand.vmem [shape: f32[16,16], index: 1, kind: input, shape index: {}]   ;;  %s611_s6 = inlined_call_operand.vmem [shape: f32[1,128], index: 6, kind: input, shape index: {}]   ;;  %s612_s7 = inlined_call_operand.vmem [shape: f32[128,128], index: 7, kind: input, shape index: {}]   ;;  %s613_s8 = inlined_call_operand.vmem [shape: f32[1,128], index: 8, kind: input, shape index: {}]   ;;  %s614_s9 = inlined_call_operand.vmem [shape: f32[1,128], index: 9, kind: input, shape index: {}]   ;;  %s615_s10 = inlined_call_operand.vmem [shape: f32[1,128], index: 10, kind: input, shape index: {}]   ;;  %s616_s2 = inlined_call_operand.vmem [shape: f32[8,16], index: 2, kind: input, shape index: {}]   ;;  %s617_s12 = inlined_call_operand.vmem [shape: f32[8,128], index: 12, kind: output, shape index: {0}]   ;;  %s618_s11 = inlined_call_operand.<no memory space> [shape: f32[1], index: 11, kind: input, shape index: {}]   ;;  %s619_s13 = inlined_call_operand.vmem [shape: f32[16,128], index: 13, kind: output, shape index: {1}]  }
   0x1   :  { %v61_v0 = vld [vmem:[%s606_s3 + $0x78] sm:$0xff]  ;;  %v60_v1 = vld [vmem:[%s606_s3 + $0x70] sm:$0xff]  ;;  %v59_v2 = vld [vmem:[%s606_s3 + $0x68] sm:$0xff] }
   0x2   :  { %62 = vmatpush.msra.mxu0 %v61_v0  ;;  %v58_v3 = vld [vmem:[%s606_s3 + $0x60] sm:$0xff]  ;;  %v57_v4 = vld [vmem:[%s606_s3 + $0x58] sm:$0xff]  ;;  %v56_v5 = vld [vmem:[%s606_s3 + $0x50] sm:$0xff] }
   0x3   :  { %v55_v6 = vld [vmem:[%s606_s3 + $0x48] sm:$0xff]  ;;  %v54_v7 = vld [vmem:[%s606_s3 + $0x40] sm:$0xff]  ;;  %v53_v8 = vld [vmem:[%s606_s3 + $0x38] sm:$0xff] }
   0x4   :  { %63 = vmatpush.msra.mxu0 %v60_v1  ;;  %v52_v9 = vld [vmem:[%s606_s3 + $0x30] sm:$0xff]  ;;  %v51_v10 = vld [vmem:[%s606_s3 + $0x28] sm:$0xff]  ;;  %v50_v11 = vld [vmem:[%s606_s3 + $0x20] sm:$0xff] }
   0x5   :  { %v49_v12 = vld [vmem:[%s606_s3 + $0x18] sm:$0xff]  ;;  %v48_v13 = vld [vmem:[%s606_s3 + $0x10] sm:$0xff]  ;;  %v47_v14 = vld [vmem:[%s606_s3 + $0x8] sm:$0xff] }
   0x6   :  { %64 = vmatpush.msra.mxu0 %v59_v2  ;;  %v46_v15 = vld [vmem:[%s606_s3] sm:$0xff]  ;;  %v45_v17 = vld [vmem:[%s607_s0 + $0x8] sm:$0xff]  ;;  %v138_v18 = vld [vmem:[%s609_s5 + $0x78] sm:$0xff] }
   0x7   :  { %v44_v16 = vld [vmem:[%s607_s0] sm:$0xff]  ;;  %v137_v19 = vld [vmem:[%s609_s5 + $0x70] sm:$0xff]  ;;  %139 = vmatpush.msra.mxu2 %v138_v18  ;;  %v136_v20 = vld [vmem:[%s609_s5 + $0x68] sm:$0xff] }
   0x8   :  { %65 = vmatpush.msra.mxu0 %v58_v3  ;;  %v135_v21 = vld [vmem:[%s609_s5 + $0x60] sm:$0xff]  ;;  %v134_v22 = vld [vmem:[%s609_s5 + $0x58] sm:$0xff]  ;;  %v133_v23 = vld [vmem:[%s609_s5 + $0x50] sm:$0xff] }
   0x9   :  { %140 = vmatpush.msra.mxu2 %v137_v19  ;;  %v132_v24 = vld [vmem:[%s609_s5 + $0x48] sm:$0xff]  ;;  %v131_v26 = vld [vmem:[%s609_s5 + $0x40] sm:$0xff]  ;;  %v130_v27 = vld [vmem:[%s609_s5 + $0x38] sm:$0xff] }
   0xa   :  { %66 = vmatpush.msra.mxu0 %v57_v4  ;;  %v129_v28 = vld [vmem:[%s609_s5 + $0x30] sm:$0xff]  ;;  %v128_v29 = vld [vmem:[%s609_s5 + $0x28] sm:$0xff]  ;;  %v127_v31 = vld [vmem:[%s609_s5 + $0x20] sm:$0xff] }
   0xb   :  { %141 = vmatpush.msra.mxu2 %v136_v20  ;;  %v85_v32 = vld [vmem:[%s610_s1] sm:$0xff]  ;;  %v126_v33 = vld [vmem:[%s609_s5 + $0x18] sm:$0xff]  ;;  %v86_v34 = vld [vmem:[%s610_s1 + $0x8] sm:$0xff] }
   0xc   :  { %67 = vmatpush.msra.mxu0 %v56_v5  ;;  %v125_v35 = vld [vmem:[%s609_s5 + $0x10] sm:$0xff]  ;;  %v124_v36 = vld [vmem:[%s609_s5 + $0x8] sm:$0xff]  ;;  %v123_v37 = vld [vmem:[%s609_s5] sm:$0xff] }
   0xd   :  { %142 = vmatpush.msra.mxu2 %v135_v21  ;;  %v335_v38 = vld [vmem:[%s608_s4] ss:$0 sm:$0xff]  ;;  %v231_v45 = vld [vmem:[%s612_s7 + $0x78] sm:$0xff]  ;;  %v230_v46 = vld [vmem:[%s612_s7 + $0x70] sm:$0xff] }
   0xe   :  { %68 = vmatpush.msra.mxu0 %v55_v6  ;;  %236 = vmatpush.msra.mxu3 %v231_v45  ;;  %v229_v47 = vld [vmem:[%s612_s7 + $0x68] sm:$0xff]  ;;  %v228_v48 = vld [vmem:[%s612_s7 + $0x60] sm:$0xff]  ;;  %v227_v49 = vld [vmem:[%s612_s7 + $0x58] sm:$0xff] }
   0xf   :  { %143 = vmatpush.msra.mxu2 %v134_v22  ;;  %v226_v50 = vld [vmem:[%s612_s7 + $0x50] sm:$0xff]  ;;  %v225_v51 = vld [vmem:[%s612_s7 + $0x48] sm:$0xff]  ;;  %v224_v53 = vld [vmem:[%s612_s7 + $0x40] sm:$0xff] }
  0x10   :  { %69 = vmatpush.msra.mxu0 %v54_v7  ;;  %237 = vmatpush.msra.mxu3 %v230_v46  ;;  %v223_v54 = vld [vmem:[%s612_s7 + $0x38] sm:$0xff]  ;;  %v222_v55 = vld [vmem:[%s612_s7 + $0x30] sm:$0xff]  ;;  %v221_v56 = vld [vmem:[%s612_s7 + $0x28] sm:$0xff]  ;;  %v344_v7 = vmov 16.0  }
  0x11   :  { %144 = vmatpush.msra.mxu2 %v133_v23  ;;  %v220_v58 = vld [vmem:[%s612_s7 + $0x20] sm:$0xff]  ;;  %v219_v59 = vld [vmem:[%s612_s7 + $0x18] sm:$0xff]  ;;  %v218_v60 = vld [vmem:[%s612_s7 + $0x10] sm:$0xff]  ;;  %340 = vrcp.f32 %v344_v7 }
  0x12   :  { %70 = vmatpush.msra.mxu0 %v53_v8  ;;  %238 = vmatpush.msra.mxu3 %v229_v47  ;;  %v217_v61 = vld [vmem:[%s612_s7 + $0x8] sm:$0xff]  ;;  %v216_v62 = vld [vmem:[%s612_s7] sm:$0xff] }
  0x13   :  { %145 = vmatpush.msra.mxu2 %v132_v24  ;;  %v336_v63 = vld [vmem:[%s611_s6] ss:$0 sm:$0xff] }
  0x14   :  { %71 = vmatpush.msra.mxu0 %v52_v9  ;;  %239 = vmatpush.msra.mxu3 %v228_v48  ;;  %v191_v6 = vld [vmem:[%s616_s2] sm:$0xff] }
  0x15   :  { %146 = vmatpush.msra.mxu2 %v131_v26  ;;  %v338_v47 = vld [vmem:[%s614_s9] ss:$0 sm:$0xff] }
  0x16   :  { %72 = vmatpush.msra.mxu0 %v51_v10  ;;  %240 = vmatpush.msra.mxu3 %v227_v49  ;;  %v337_v10 = vld [vmem:[%s613_s8] ss:$0 sm:$0xff] }
  0x17   :  { %147 = vmatpush.msra.mxu2 %v130_v27  ;;  %v341_v9 = vpop.eup %340 }
  0x18   :  { %73 = vmatpush.msra.mxu0 %v50_v11  ;;  %241 = vmatpush.msra.mxu3 %v226_v50  ;;  %v267_v11 = vmul.f32 16.0, %v341_v9  ;;  %vm271_vm1 = vweird.f32 %v341_v9 }
  0x19   :  { %148 = vmatpush.msra.mxu2 %v129_v28 }
  0x1a   :  { %74 = vmatpush.msra.mxu0 %v49_v12  ;;  %242 = vmatpush.msra.mxu3 %v225_v51  ;;  %v339_v51 = vld [vmem:[%s615_s10] ss:$0 sm:$0xff] }
  0x1b   :  { %149 = vmatpush.msra.mxu2 %v128_v29 }
  0x1c   :  { %75 = vmatpush.msra.mxu0 %v48_v13  ;;  %243 = vmatpush.msra.mxu3 %v224_v53 }
  0x1d   :  { %150 = vmatpush.msra.mxu2 %v127_v31 }
  0x1e   :  { %76 = vmatpush.msra.mxu0 %v47_v14  ;;  %244 = vmatpush.msra.mxu3 %v223_v54  ;;  %v314_v54 = vstv %s618_s11 }
  0x1f   :  { %151 = vmatpush.msra.mxu2 %v126_v33 }
  0x20   :  { %77 = vmatpush.msra.mxu0 %v46_v15  ;;  %245 = vmatpush.msra.mxu3 %v222_v55  ;;  %v268_v15 = vsub.f32 1.0, %v267_v11 }
  0x21   :  { %78 = vmatmul.f32.vlgmr.msra.gmra.mxu0 %v44_v16  ;;  %152 = vmatpush.msra.mxu2 %v125_v35 }
  0x22   :  { %246 = vmatpush.msra.mxu3 %v221_v56  ;;  %v269_v18 = vmul.f32 %v341_v9, %v268_v15 }
  0x23   :  { %153 = vmatpush.msra.mxu2 %v124_v36 }
  0x24   :  { %247 = vmatpush.msra.mxu3 %v220_v58  ;;  %v270_v21 = vadd.f32 %v341_v9, %v269_v18 }
  0x25   :  { %154 = vmatpush.msra.mxu2 %v123_v37 }
  0x26   :  { %248 = vmatpush.msra.mxu3 %v219_v59  ;;  %v272_v24 = vsel %vm271_vm1, %v341_v9, %v270_v21 }
  0x28   :  { %249 = vmatpush.msra.mxu3 %v218_v60 }
  0x29   :  { %81 = vmatmul.f32.gmra.mxu0 %v45_v17 }
  0x2a   :  { %250 = vmatpush.msra.mxu3 %v217_v61 }
  0x2c   :  { %251 = vmatpush.msra.mxu3 %v216_v62 }
  0x9e   :  { %v79_v25 = vpop.f32.mrf.mxu0 }
  0xa6   :  { %v82_v30 = vpop.f32.mrf.mxu0 }
  0xa7   :  { %112 = vmatpush.msra.mxu1 %v82_v30 }
  0xa9   :  { %113 = vmatpush.msra.mxu1 %v79_v25 }
  0xaa   :  { %329 = vmatmul.msk.f32.vlgmr.msra.gmra.mxu1 %vm91_vm0, %v85_v32 }
  0xb2   :  { %330 = vmatmul.msk.f32.gmra.mxu1 %vm91_vm0, %v86_v34 }
 0x127   :  { %v115_v39 = vpop.f32.mrf.mxu1 }
 0x128   :  { %v116_v40 = vadd.f32 %v335_v38, %v115_v39 }
 0x12a   :  { %v121_v41 = vmax.f32 %v116_v40, 0.0 }
 0x12c   :  { %155 = vmatmul.f32.vlgmr.msra.gmra.mxu2 %v121_v41 }
 0x12f   :  { %v118_v42 = vpop.f32.mrf.mxu1 }
 0x130   :  { %v119_v43 = vadd.f32 %v335_v38, %v118_v42 }
 0x132   :  { %v122_v44 = vmax.f32 %v119_v43, 0.0 }
 0x134   :  { %158 = vmatmul.f32.gmra.mxu2 %v122_v44 }
 0x1af   :  { %v156_v52 = vpop.f32.mrf.mxu2 }
 0x1b7   :  { %v159_v57 = vpop.f32.mrf.mxu2 }
 0x1b8   :  { %180 = vmatpush.msrb.mxu1 %v159_v57 }
 0x1ba   :  { %181 = vmatpush.msrb.mxu1 %v156_v52 }
 0x1bb   :  { %331 = vmatmul.msk.f32.vlgmr.msrb.gmra.mxu1 %vm91_vm0, %v85_v32 }
 0x1c3   :  { %332 = vmatmul.msk.f32.gmra.mxu1 %vm91_vm0, %v86_v34 }
 0x238   :  { %v183_v0 = vpop.f32.mrf.mxu1 }
 0x239   :  { %v184_v1 = vadd.f32 %v336_v63, %v183_v0 }
 0x23b   :  { %v189_v2 = vmax.f32 %v184_v1, 0.0 }
 0x23d   :  { %252 = vmatmul.f32.vlgmr.msra.gmra.mxu3 %v189_v2 }
 0x240   :  { %v186_v3 = vpop.f32.mrf.mxu1 }
 0x241   :  { %v187_v4 = vadd.f32 %v336_v63, %v186_v3 }
 0x243   :  { %v190_v5 = vmax.f32 %v187_v4, 0.0 }
 0x245   :  { %255 = vmatmul.f32.gmra.mxu3 %v190_v5  ;;  %209 = vmatpush.msra.mxu1 %v190_v5 }
 0x247   :  { %210 = vmatpush.msra.mxu1 %v189_v2 }
 0x248   :  { %333 = vmatmul.msk.f32.vlgmr.msra.gmra.mxu1 %vm91_vm0, %v191_v6 }
 0x2c0   :  { %v253_v8 = vpop.f32.mrf.mxu3 }
 0x2c1   :  { %v254_v13 = vadd.f32 %v337_v10, %v253_v8 }
 0x2c5   :  { %v212_v38 = vpop.f32.mrf.mxu1 }
 0x2c6   :  { %215 = vst [vmem:[%s617_s12] sm:$0xff] %v212_v38 }
 0x2c8   :  { %v256_v12 = vpop.f32.mrf.mxu3 }
 0x2c9   :  { %v257_v14 = vadd.f32 %v337_v10, %v256_v12 }
 0x2cb   :  { %v259_v16 = vadd.f32 %v257_v14, %v254_v13 }
 0x2cd   :  { %v260_v17 = vrot.slane %v259_v16, 4 }
 0x2cf   :  { %v261_v19 = vadd.f32 %v260_v17, %v259_v16 }
 0x2d1   :  { %v262_v20 = vrot.slane %v261_v19, 2 }
 0x2d3   :  { %v263_v22 = vadd.f32 %v262_v20, %v261_v19 }
 0x2d5   :  { %v264_v23 = vrot.slane %v263_v22, 1 }
 0x2d7   :  { %v265_v25 = vadd.f32 %v264_v23, %v263_v22 }
 0x2d9   :  { %v273_v26 = vmul.f32 %v272_v24, %v265_v25 }
 0x2db   :  { %v274_v27 = vsub.f32 %v254_v13, %v273_v26  ;;  %v275_v28 = vsub.f32 %v257_v14, %v273_v26 }
 0x2dd   :  { %v276_v29 = vmul.f32 %v274_v27, %v274_v27  ;;  %v277_v30 = vmul.f32 %v275_v28, %v275_v28 }
 0x2df   :  { %v278_v31 = vadd.f32 %v277_v30, %v276_v29 }
 0x2e1   :  { %v279_v32 = vrot.slane %v278_v31, 4 }
 0x2e3   :  { %v280_v33 = vadd.f32 %v279_v32, %v278_v31 }
 0x2e5   :  { %v281_v34 = vrot.slane %v280_v33, 2 }
 0x2e7   :  { %v282_v35 = vadd.f32 %v281_v34, %v280_v33 }
 0x2e9   :  { %v283_v36 = vrot.slane %v282_v35, 1 }
 0x2eb   :  { %v284_v37 = vadd.f32 %v283_v36, %v282_v35 }
 0x2ed   :  { %v285_v39 = vmul.f32 %v284_v37, %v272_v24 }
 0x2ef   :  { %v286_v40 = vadd.f32 1e-05, %v285_v39 }
 0x2f1   :  { %342 = vrsqrt.f32 %v286_v40  ;;  %vm293_vm3 = vweird.f32 %v286_v40 }
 0x2f7   :  { %v343_v41 = vpop.eup %342 }
 0x2f8   :  { %v288_v42 = vmul.f32 %v343_v41, %v286_v40  ;;  %vm294_vm2 = vweird.f32 %v343_v41 }
 0x2f9   :  { %vm295_vm4 = vmor %vm293_vm3, %vm294_vm2 }
 0x2fa   :  { %v289_v43 = vmul.f32 %v343_v41, %v288_v42 }
 0x2fc   :  { %v290_v44 = vmul.f32 0.5, %v289_v43 }
 0x2fe   :  { %v291_v45 = vsub.f32 1.5, %v290_v44 }
 0x300   :  { %v292_v46 = vmul.f32 %v343_v41, %v291_v45 }
 0x302   :  { %v296_v48 = vsel %vm295_vm4, %v343_v41, %v292_v46 }
 0x303   :  { %v297_v49 = vmul.f32 %v296_v48, %v274_v27  ;;  %v298_v50 = vmul.f32 %v296_v48, %v275_v28 }
 0x305   :  { %v303_v52 = vmul.f32 %v338_v47, %v297_v49  ;;  %v304_v53 = vmul.f32 %v338_v47, %v298_v50 }
 0x307   :  { %v309_v55 = vadd.f32 %v339_v51, %v303_v52  ;;  %v310_v56 = vadd.f32 %v339_v51, %v304_v53 }
 0x309   :  { %vm312_vm5 = vcmp.ge.f32.partialorder %v309_v55, 0.0  ;;  %vm313_vm6 = vcmp.ge.f32.partialorder %v310_v56, 0.0  ;;  %v315_v57 = vmul.f32 %v314_v54, %v309_v55  ;;  %v316_v58 = vmul.f32 %v314_v54, %v310_v56 }
 0x30b   :  { %v317_v59 = vsel %vm312_vm5, %v309_v55, %v315_v57  ;;  %v318_v60 = vsel %vm313_vm6, %v310_v56, %v316_v58 }
 0x30c   :  { %319 = vst [vmem:[%s619_s13] sm:$0xff] %v317_v59 }
 0x30d   :  { %320 = vst [vmem:[%s619_s13 + $0x8] sm:$0xff] %v318_v60 }

</bundles_post_ra>
